<compile_context>
chip_gen: v5e
topology: v5e:2x2
jax: 0.10.0
libtpu: 0.0.40
codegen_flags: <defaults>
</compile_context>

<pallas_src>
import functools

import jax
import jax.numpy as jnp
from jax import lax
from jax.experimental import pallas as pl
from jax.experimental.pallas import tpu as pltpu


def _spectral_con_kernel(x_ref, y_ref, out_ref,
                         gx_ref, gy_ref, xy_ref, dsq_ref, *,
                         inv_n: float, inv_off: float, mxu_dtype):
    """One row tile per grid step: accumulate Gram matrices + row-dot sums."""
    i = pl.program_id(0)

    @pl.when(i == 0)
    def _init():
        gx_ref[...] = jnp.zeros_like(gx_ref)
        gy_ref[...] = jnp.zeros_like(gy_ref)
        xy_ref[...] = jnp.zeros_like(xy_ref)
        dsq_ref[...] = jnp.zeros_like(dsq_ref)

    x = x_ref[...]          # (tm, dim), native dtype
    y = y_ref[...]          # (tm, dim)

    # Gram accumulation on the MXU, contracting over the row-tile axis
    # (no explicit transpose; f32 accumulation).
    xm = x.astype(mxu_dtype)
    ym = y.astype(mxu_dtype)
    dn = (((0,), (0,)), ((), ()))
    gx_ref[...] += lax.dot_general(xm, xm, dimension_numbers=dn,
                                   preferred_element_type=jnp.float32)
    gy_ref[...] += lax.dot_general(ym, ym, dimension_numbers=dn,
                                   preferred_element_type=jnp.float32)

    # Row-wise dots give both sum(X*Y) and the diagonal of X @ Y.T
    # (diag entries are x_r . y_r).  Kept in f32 regardless of mxu_dtype.
    prod = x.astype(jnp.float32) * y.astype(jnp.float32)      # (tm, dim)
    rd = jnp.sum(prod, axis=-1, keepdims=True)                 # (tm, 1)
    xy_ref[...] += rd
    dsq_ref[...] += rd * rd

    @pl.when(i == pl.num_programs(0) - 1)
    def _finalize():
        sum_sq = jnp.sum(gx_ref[...] * gy_ref[...])    # == sum((X @ Y.T)^2)
        sum_xy = jnp.sum(xy_ref[...])                  # == sum(X * Y)
        sum_dsq = jnp.sum(dsq_ref[...])                # == sum(diag(X@Y.T)^2)
        # loss = -(diag + off_diag)
        out_ref[0, 0] = -2.0 * sum_xy * inv_n + (sum_sq - sum_dsq) * inv_off


def _round_up(x: int, m: int) -> int:
    return ((x + m - 1) // m) * m


# Keep total scratch + double-buffered input blocks under ~24 MiB so the
# 32 MiB scoped-VMEM limit (legal on v5e / v6e / v7x) always has headroom.
_VMEM_BUDGET = 24 * 1024 * 1024


def _pick_row_tile(npts: int, dim: int, itemsize: int) -> int:
    dim_lanes = max(_round_up(dim, 128), 128)
    dim_sub = max(_round_up(dim, 8), 8)
    gram_bytes = 2 * dim_sub * dim_lanes * 4            # gx + gy f32 scratch
    if gram_bytes > _VMEM_BUDGET:
        # TODO(synk): fall back to 2-D (i, j) tiling of X @ Y.T for huge dim.
        raise NotImplementedError(
            "dim too large for the Gram-matrix formulation in VMEM")
    max_rows = _round_up(max(npts, 16), 16)
    tm = 16
    for t in (1024, 512, 256, 128, 64, 32, 16):
        if t > max_rows:
            continue
        io_bytes = 2 * 2 * t * dim_lanes * itemsize     # X, Y double-buffered
        vec_bytes = 2 * _round_up(t, 8) * 128 * 4       # xy / dsq accumulators
        if gram_bytes + io_bytes + vec_bytes <= _VMEM_BUDGET:
            tm = t
            break
    return tm


def spectral_con_loss(data: jax.Array, next_data: jax.Array,
                      block_rows: int | None = None,
                      use_bf16_matmul: bool = False) -> jax.Array:
    """Pallas TPU SpectralConLoss. data, next_data: [npts, dim]. Returns scalar.

    use_bf16_matmul=True feeds the two Gram matmuls in bf16 (f32 accumulation)
    for ~3x MXU throughput at a small accuracy cost on the off-diagonal term.
    """
    assert data.shape == next_data.shape and data.ndim == 2
    npts, dim = data.shape
    assert npts >= 2, "SpectralConLoss needs npts >= 2 (npts - 1 denominator)"

    itemsize = jnp.dtype(data.dtype).itemsize
    min_rows = 8 if itemsize >= 4 else 16
    if block_rows is not None:
        assert block_rows % min_rows == 0, (
            f"block_rows must be a multiple of {min_rows} for this dtype")
        tm = block_rows
    else:
        tm = _pick_row_tile(npts, dim, itemsize)

    # Zero-pad npts up to a multiple of the row tile: padded rows contribute
    # exactly 0 to Gx, Gy, sum(X*Y) and the diagonal sums.
    padded = pl.cdiv(npts, tm) * tm
    if padded != npts:
        pad = padded - npts
        data = jnp.pad(data, ((0, pad), (0, 0)))
        next_data = jnp.pad(next_data, ((0, pad), (0, 0)))
    grid = (padded // tm,)

    mxu_dtype = jnp.bfloat16 if use_bf16_matmul else data.dtype
    kernel = functools.partial(
        _spectral_con_kernel,
        inv_n=1.0 / float(npts),
        inv_off=1.0 / (float(npts) * (float(npts) - 1.0)),
        mxu_dtype=mxu_dtype,
    )

    out = pl.pallas_call(
        kernel,
        out_shape=jax.ShapeDtypeStruct((1, 1), jnp.float32),
        grid_spec=pltpu.PrefetchScalarGridSpec(
            num_scalar_prefetch=0,
            grid=grid,
            in_specs=[
                pl.BlockSpec((tm, dim), lambda i: (i, 0)),   # X row tile
                pl.BlockSpec((tm, dim), lambda i: (i, 0)),   # Y row tile
            ],
            # Scalar loss in SMEM: avoids a masked partial vector store into a
            # padded (8,128) VMEM tile for a 1x1 result.
            out_specs=pl.BlockSpec(memory_space=pltpu.MemorySpace.SMEM),
            scratch_shapes=[
                pltpu.VMEM((dim, dim), jnp.float32),   # Gx accumulator
                pltpu.VMEM((dim, dim), jnp.float32),   # Gy accumulator
                pltpu.VMEM((tm, 1), jnp.float32),      # sum(X*Y) per-row acc
                pltpu.VMEM((tm, 1), jnp.float32),      # sum(diag^2) per-row acc
            ],
        ),
        # Single reduction axis feeding shared VMEM accumulators; must stay
        # sequential (see TODO at top for v7x megacore partial sums).
        compiler_params=pltpu.CompilerParams(
            dimension_semantics=("arbitrary",),
            vmem_limit_bytes=32 * 1024 * 1024),
    )(data, next_data)
    return out[0, 0]


def spectral_con_loss_ref(X, Y):
    """Pure-JAX reference mirroring the PyTorch module."""
    npts, dim = X.shape
    diag = 2.0 * jnp.mean(X * Y) * dim
    sq = jnp.square(X @ Y.T)
    off = sq * (1.0 - jnp.eye(npts, dtype=sq.dtype))   # triu(1) + tril(-1)
    off_diag = -(jnp.mean(off) * npts / (npts - 1))
    return -(diag + off_diag)


if __name__ == "__main__":
    key = jax.random.PRNGKey(0)
    k1, k2, k3, k4, k5, k6 = jax.random.split(key, 6)

    # Small shapes consistent with the module: [npts, dim] representation pairs.
    B, D = 8, 32
    x = jax.random.normal(k1, (B, D), dtype=jnp.float32)
    y = jax.random.normal(k2, (B, D), dtype=jnp.float32)
    loss = jax.block_until_ready(spectral_con_loss(x, y))
    ref = spectral_con_loss_ref(x, y)
    assert jnp.allclose(loss, ref, atol=1e-3, rtol=1e-3), (loss, ref)

    # Exercise the multi-tile (streaming Gram accumulation) path: 4 tiles of 16.
    B2, D2 = 64, 32
    x2 = jax.random.normal(k3, (B2, D2), dtype=jnp.float32)
    y2 = jax.random.normal(k4, (B2, D2), dtype=jnp.float32)
    loss2 = jax.block_until_ready(spectral_con_loss(x2, y2, block_rows=16))
    ref2 = spectral_con_loss_ref(x2, y2)
    assert jnp.allclose(loss2, ref2, atol=1e-3, rtol=1e-3), (loss2, ref2)

    # Ragged npts / dim (zero-padded rows, full-extent dim block).
    B3, D3 = 50, 40
    x3 = jax.random.normal(k5, (B3, D3), dtype=jnp.float32)
    y3 = jax.random.normal(k6, (B3, D3), dtype=jnp.float32)
    loss3 = jax.block_until_ready(spectral_con_loss(x3, y3))
    ref3 = spectral_con_loss_ref(x3, y3)
    assert jnp.allclose(loss3, ref3, atol=1e-3, rtol=1e-3), (loss3, ref3)

    # bf16 MXU-feed path (accuracy tradeoff on the off-diagonal term).
    loss3_bf16 = jax.block_until_ready(
        spectral_con_loss(x3, y3, use_bf16_matmul=True))
    assert jnp.allclose(loss3_bf16, ref3, atol=0.1, rtol=0.1), (loss3_bf16, ref3)

    print("KERNEL_OK")
</pallas_src>

<mosaic_0001>
module attributes {stable_mosaic.version = 11 : i64} {
  func.func @_spectral_con_kernel(%arg0: i32, %arg1: memref<16x32xf32, #tpu.memory_space<vmem>>, %arg2: memref<16x32xf32, #tpu.memory_space<vmem>>, %arg3: memref<1x1xf32, #tpu.memory_space<smem>>, %arg4: memref<32x32xf32, #tpu.memory_space<vmem>>, %arg5: memref<32x32xf32, #tpu.memory_space<vmem>>, %arg6: memref<16x1xf32, #tpu.memory_space<vmem>>, %arg7: memref<16x1xf32, #tpu.memory_space<vmem>>) attributes {dimension_semantics = [#tpu.dimension_semantics<arbitrary>], iteration_bounds = array<i64: 1>, scalar_prefetch = 0 : i64, scratch_operands = 4 : i64, tpu.core_type = #tpu.core_type<tc>, window_params = [{transform_indices = @transform_0, window_bounds = array<i64: 16, 32>}, {transform_indices = @transform_1, window_bounds = array<i64: 16, 32>}, {transform_indices = @transform_2, window_bounds = array<i64: 1, 1>}]} {
    %c0_i32 = arith.constant 0 : i32
    %0 = arith.cmpi eq, %arg0, %c0_i32 : i32
    %1 = arith.extui %0 : i1 to i32
    %c0_i32_0 = arith.constant 0 : i32
    %2 = arith.cmpi ne, %1, %c0_i32_0 : i32
    scf.if %2 {
      %cst_24 = arith.constant 0.000000e+00 : f32
      %26 = vector.broadcast %cst_24 : f32 to vector<32x32xf32>
      %c0_25 = arith.constant 0 : index
      %c0_26 = arith.constant 0 : index
      %27 = vector.load %arg4[%c0_25, %c0_26] : memref<32x32xf32, #tpu.memory_space<vmem>>, vector<32x32xf32>
      tpu.vector_store %arg4[%c0_25, %c0_26], %26 {strides = array<i32>} : memref<32x32xf32, #tpu.memory_space<vmem>>, vector<32x32xf32>,
      %cst_27 = arith.constant 0.000000e+00 : f32
      %28 = vector.broadcast %cst_27 : f32 to vector<32x32xf32>
      %c0_28 = arith.constant 0 : index
      %c0_29 = arith.constant 0 : index
      %29 = vector.load %arg5[%c0_28, %c0_29] : memref<32x32xf32, #tpu.memory_space<vmem>>, vector<32x32xf32>
      tpu.vector_store %arg5[%c0_28, %c0_29], %28 {strides = array<i32>} : memref<32x32xf32, #tpu.memory_space<vmem>>, vector<32x32xf32>,
      %cst_30 = arith.constant 0.000000e+00 : f32
      %30 = vector.broadcast %cst_30 : f32 to vector<16x1xf32>
      %c0_31 = arith.constant 0 : index
      %c0_32 = arith.constant 0 : index
      %31 = vector.load %arg6[%c0_31, %c0_32] : memref<16x1xf32, #tpu.memory_space<vmem>>, vector<16x1xf32>
      tpu.vector_store %arg6[%c0_31, %c0_32], %30 {strides = array<i32>} : memref<16x1xf32, #tpu.memory_space<vmem>>, vector<16x1xf32>,
      %cst_33 = arith.constant 0.000000e+00 : f32
      %32 = vector.broadcast %cst_33 : f32 to vector<16x1xf32>
      %c0_34 = arith.constant 0 : index
      %c0_35 = arith.constant 0 : index
      %33 = vector.load %arg7[%c0_34, %c0_35] : memref<16x1xf32, #tpu.memory_space<vmem>>, vector<16x1xf32>
      tpu.vector_store %arg7[%c0_34, %c0_35], %32 {strides = array<i32>} : memref<16x1xf32, #tpu.memory_space<vmem>>, vector<16x1xf32>,
    } else {
    }
    %c0 = arith.constant 0 : index
    %c0_1 = arith.constant 0 : index
    %3 = vector.load %arg1[%c0, %c0_1] : memref<16x32xf32, #tpu.memory_space<vmem>>, vector<16x32xf32>
    %c0_2 = arith.constant 0 : index
    %c0_3 = arith.constant 0 : index
    %4 = vector.load %arg2[%c0_2, %c0_3] : memref<16x32xf32, #tpu.memory_space<vmem>>, vector<16x32xf32>
    %c0_4 = arith.constant 0 : index
    %c0_5 = arith.constant 0 : index
    %5 = vector.load %arg4[%c0_4, %c0_5] : memref<32x32xf32, #tpu.memory_space<vmem>>, vector<32x32xf32>
    %cst = arith.constant dense<0.000000e+00> : vector<32x32xf32>
    %6 = tpu.matmul %3, %3, %cst {dimension_numbers = #tpu.dot_dimension_numbers<[0], [0], [1], [1], [0, 1, 1, 1], [], []>} : vector<16x32xf32>, vector<16x32xf32>, vector<32x32xf32> -> vector<32x32xf32>
    %7 = arith.addf %5, %6 : vector<32x32xf32>
    %c0_6 = arith.constant 0 : index
    %c0_7 = arith.constant 0 : index
    %8 = vector.load %arg4[%c0_6, %c0_7] : memref<32x32xf32, #tpu.memory_space<vmem>>, vector<32x32xf32>
    tpu.vector_store %arg4[%c0_6, %c0_7], %7 {strides = array<i32>} : memref<32x32xf32, #tpu.memory_space<vmem>>, vector<32x32xf32>,
    %c0_8 = arith.constant 0 : index
    %c0_9 = arith.constant 0 : index
    %9 = vector.load %arg5[%c0_8, %c0_9] : memref<32x32xf32, #tpu.memory_space<vmem>>, vector<32x32xf32>
    %cst_10 = arith.constant dense<0.000000e+00> : vector<32x32xf32>
    %10 = tpu.matmul %4, %4, %cst_10 {dimension_numbers = #tpu.dot_dimension_numbers<[0], [0], [1], [1], [0, 1, 1, 1], [], []>} : vector<16x32xf32>, vector<16x32xf32>, vector<32x32xf32> -> vector<32x32xf32>
    %11 = arith.addf %9, %10 : vector<32x32xf32>
    %c0_11 = arith.constant 0 : index
    %c0_12 = arith.constant 0 : index
    %12 = vector.load %arg5[%c0_11, %c0_12] : memref<32x32xf32, #tpu.memory_space<vmem>>, vector<32x32xf32>
    tpu.vector_store %arg5[%c0_11, %c0_12], %11 {strides = array<i32>} : memref<32x32xf32, #tpu.memory_space<vmem>>, vector<32x32xf32>,
    %13 = arith.mulf %3, %4 : vector<16x32xf32>
    %cst_13 = arith.constant dense<0.000000e+00> : vector<16xf32>
    %14 = vector.multi_reduction <add>, %13, %cst_13 [1] : vector<16x32xf32> to vector<16xf32>
    %15 = vector.shape_cast %14 : vector<16xf32> to vector<16x1xf32>
    %c0_14 = arith.constant 0 : index
    %c0_15 = arith.constant 0 : index
    %16 = vector.load %arg6[%c0_14, %c0_15] : memref<16x1xf32, #tpu.memory_space<vmem>>, vector<16x1xf32>
    %17 = arith.addf %16, %15 : vector<16x1xf32>
    %c0_16 = arith.constant 0 : index
    %c0_17 = arith.constant 0 : index
    %18 = vector.load %arg6[%c0_16, %c0_17] : memref<16x1xf32, #tpu.memory_space<vmem>>, vector<16x1xf32>
    tpu.vector_store %arg6[%c0_16, %c0_17], %17 {strides = array<i32>} : memref<16x1xf32, #tpu.memory_space<vmem>>, vector<16x1xf32>,
    %c0_18 = arith.constant 0 : index
    %c0_19 = arith.constant 0 : index
    %19 = vector.load %arg7[%c0_18, %c0_19] : memref<16x1xf32, #tpu.memory_space<vmem>>, vector<16x1xf32>
    %20 = arith.mulf %15, %15 : vector<16x1xf32>
    %21 = arith.addf %19, %20 : vector<16x1xf32>
    %c0_20 = arith.constant 0 : index
    %c0_21 = arith.constant 0 : index
    %22 = vector.load %arg7[%c0_20, %c0_21] : memref<16x1xf32, #tpu.memory_space<vmem>>, vector<16x1xf32>
    tpu.vector_store %arg7[%c0_20, %c0_21], %21 {strides = array<i32>} : memref<16x1xf32, #tpu.memory_space<vmem>>, vector<16x1xf32>,
    %c0_i32_22 = arith.constant 0 : i32
    %23 = arith.cmpi eq, %arg0, %c0_i32_22 : i32
    %24 = arith.extui %23 : i1 to i32
    %c0_i32_23 = arith.constant 0 : i32
    %25 = arith.cmpi ne, %24, %c0_i32_23 : i32
    scf.if %25 {
      %c0_24 = arith.constant 0 : index
      %c0_25 = arith.constant 0 : index
      %26 = vector.load %arg4[%c0_24, %c0_25] : memref<32x32xf32, #tpu.memory_space<vmem>>, vector<32x32xf32>
      %c0_26 = arith.constant 0 : index
      %c0_27 = arith.constant 0 : index
      %27 = vector.load %arg5[%c0_26, %c0_27] : memref<32x32xf32, #tpu.memory_space<vmem>>, vector<32x32xf32>
      %28 = arith.mulf %26, %27 : vector<32x32xf32>
      %29 = vector.shape_cast %28 : vector<32x32xf32> to vector<1x32x32xf32>
      %cst_28 = arith.constant dense<0.000000e+00> : vector<1xf32>
      %30 = vector.multi_reduction <add>, %29, %cst_28 [1, 2] : vector<1x32x32xf32> to vector<1xf32>
      %31 = vector.shape_cast %30 : vector<1xf32> to vector<1x1x1xf32>
      %32 = vector.extract %31[0, 0, 0] : f32 from vector<1x1x1xf32>
      %c0_29 = arith.constant 0 : index
      %c0_30 = arith.constant 0 : index
      %33 = vector.load %arg6[%c0_29, %c0_30] : memref<16x1xf32, #tpu.memory_space<vmem>>, vector<16x1xf32>
      %34 = vector.shape_cast %33 : vector<16x1xf32> to vector<1x16x1xf32>
      %cst_31 = arith.constant dense<0.000000e+00> : vector<1xf32>
      %35 = vector.multi_reduction <add>, %34, %cst_31 [1, 2] : vector<1x16x1xf32> to vector<1xf32>
      %36 = vector.shape_cast %35 : vector<1xf32> to vector<1x1x1xf32>
      %37 = vector.extract %36[0, 0, 0] : f32 from vector<1x1x1xf32>
      %c0_32 = arith.constant 0 : index
      %c0_33 = arith.constant 0 : index
      %38 = vector.load %arg7[%c0_32, %c0_33] : memref<16x1xf32, #tpu.memory_space<vmem>>, vector<16x1xf32>
      %39 = vector.shape_cast %38 : vector<16x1xf32> to vector<1x16x1xf32>
      %cst_34 = arith.constant dense<0.000000e+00> : vector<1xf32>
      %40 = vector.multi_reduction <add>, %39, %cst_34 [1, 2] : vector<1x16x1xf32> to vector<1xf32>
      %41 = vector.shape_cast %40 : vector<1xf32> to vector<1x1x1xf32>
      %42 = vector.extract %41[0, 0, 0] : f32 from vector<1x1x1xf32>
      %cst_35 = arith.constant -2.000000e+00 : f32
      %43 = arith.mulf %cst_35, %37 : f32
      %cst_36 = arith.constant 1.250000e-01 : f32
      %44 = arith.mulf %43, %cst_36 : f32
      %45 = arith.subf %32, %42 : f32
      %cst_37 = arith.constant 0.0178571437 : f32
      %46 = arith.mulf %45, %cst_37 : f32
      %47 = arith.addf %44, %46 : f32
      %c0_38 = arith.constant 0 : index
      %c0_39 = arith.constant 0 : index
      %48 = memref.load %arg3[%c0_38, %c0_39] : memref<1x1xf32, #tpu.memory_space<smem>>
      memref.store %47, %arg3[%c0_38, %c0_39] : memref<1x1xf32, #tpu.memory_space<smem>>
    } else {
    }
    return
  }
  func.func @transform_0(%arg0: i32) -> (i32, i32) {
    %c0_i32 = arith.constant 0 : i32
    %c0_i32_0 = arith.constant 0 : i32
    return %arg0, %c0_i32 : i32, i32
  }
  func.func @transform_1(%arg0: i32) -> (i32, i32) {
    %c0_i32 = arith.constant 0 : i32
    %c0_i32_0 = arith.constant 0 : i32
    return %arg0, %c0_i32 : i32, i32
  }
  func.func @transform_2(%arg0: i32) -> (i32, i32) {
    %c0_i32 = arith.constant 0 : i32
    %c0_i32_0 = arith.constant 0 : i32
    %c0_i32_1 = arith.constant 0 : i32
    return %c0_i32, %c0_i32_0 : i32, i32
  }
}

</mosaic_0001>

<bundles_post_ra>
// kernel: tpu_custom_call.1
= control target key start
LH: loop header
LB: loop body
LE: loop exit
PB: predicated region body
PF: predicated region fallthrough
CT: control target
= control target key end

     0   :  { %7 = vsyncpa [#allocation7], 0  ;;  %s506_s0 = inlined_call_operand.hbm [shape: f32[16,32], index: 0, kind: input, shape index: {}]   ;;  %s507_s1 = inlined_call_operand.hbm [shape: f32[16,32], index: 1, kind: input, shape index: {}]   ;;  %s508_s2 = inlined_call_operand.hbm [shape: f32[1,1], index: 2, kind: output, shape index: {}]  }
   0x1   :  { %8 = vsyncpa [#allocation10], 0 }
   0x2   :  { %9 = vsyncpa [#allocation8], 0  ;;  %s14_s11 = sshll.u32 %s506_s0, 4  ;;  %s434_s12 = smov [#allocation6]   ;;  %s15_s11 = int_to_ptr.hbm [resolvable:$true] %s14_s11 }
   0x3   :  { %s16_s13 = sshll.u32 %s434_s12, 4  ;;  %s27_s16 = sshll.u32 %s507_s1, 4  ;;  %s17_s13 = int_to_ptr.vmem [resolvable:$true] %s16_s13  ;;  %s28_s16 = int_to_ptr.hbm [resolvable:$true] %s27_s16 }
   0x4   :  { %s435_s17 = smov 128   ;;  %s436_s18 = smov 8  }
   0x5   :  { %22 = dma.hbm_to_vmem [thread:$0]  %s15_s11, 256, %s17_s13, [#allocation7], %s435_s17, %s435_s17, %s436_s18  }
   0x6   :  { %s437_s19 = smov [#allocation9]  }
   0x7   :  { %s29_s20 = sshll.u32 %s437_s19, 4  ;;  %s30_s20 = int_to_ptr.vmem [resolvable:$true] %s29_s20 }
   0x8   :  { %35 = dma.hbm_to_vmem [thread:$0]  %s28_s16, 256, %s30_s20, [#allocation10], %s435_s17, %s435_s17, %s436_s18  }
   0x9   :  { %428 = dma.done.wait [#allocation7], 256  }
   0xa   :  { %429 = vsyncadd [#allocation7], 4294967040 }
   0xb   :  { %430 = dma.done.wait [#allocation10], 256  }
   0xc   :  { %431 = vsyncadd [#allocation10], 4294967040  ;;  %v64_v0 = vld [vmem:[#allocation9] sm:$0xff]  ;;  %v62_v1 = vld [vmem:[#allocation6] sm:$0xff]  ;;  %vm48_vm0 = vcmask 261120   ;;  %v438_v8 = vmov 0.0  }
   0xd   :  { %157 = vxpose.xlu1.b32.start [1/2] (short) (narrow) %v64_v0, 32  ;;  %70 = vxpose.xlu0.b32.start [1/2] (short) (narrow) %v62_v1, 32  ;;  %v65_v2 = vld [vmem:[#allocation9 + $0x8] sm:$0xff]  ;;  %v63_v3 = vld [vmem:[#allocation6 + $0x8] sm:$0xff]  ;;  %v238_v4 = vmul.f32 %v64_v0, %v62_v1  ;;  %49 = vst.msk [vmem:[#allocation2] sm:$0xff] %vm48_vm0, %v438_v8  ;;  %vm102_vm1 = vcmask 130048  }
   0xe   :  { %129 = vmatpush.msra.mxu0 %v63_v3  ;;  %215 = vmatpush.msra.mxu1 %v65_v2  ;;  %v239_v6 = vmul.f32 %v65_v2, %v63_v3  ;;  %50 = vst.msk [vmem:[#allocation2 + $0x8] sm:$0xff] %vm48_vm0, %v438_v8  ;;  %vm57_vm2 = vcmask 7168   ;;  %s332_s26 = sshll.u32 %s508_s2, 4  ;;  %s439_s30 = smov [#allocation11]   ;;  %s333_s26 = int_to_ptr.hbm [resolvable:$true] %s332_s26 }
   0xf   :  { %352 = vmatpush.msra.mxu2 %v63_v3  ;;  %354 = vmatpush.msra.mxu3 %v65_v2  ;;  %v240_v5 = vsel %vm48_vm0, %v238_v4, 0.0  ;;  %51 = vst.msk [vmem:[#allocation2 + $0x10] sm:$0xff] %vm48_vm0, %v438_v8 }
  0x10   :  { %216 = vmatpush.msra.mxu1 %v64_v0  ;;  %130 = vmatpush.msra.mxu0 %v62_v1  ;;  %v243_v7 = vsel %vm48_vm0, %v239_v6, 0.0  ;;  %52 = vst.msk [vmem:[#allocation2 + $0x18] sm:$0xff] %vm48_vm0, %v438_v8 }
  0x11   :  { %355 = vmatpush.msra.mxu3 %v64_v0  ;;  %353 = vmatpush.msra.mxu2 %v62_v1  ;;  %53 = vst.msk [vmem:[#allocation3] sm:$0xff] %vm48_vm0, %v438_v8 }
  0x12   :  { %241 = vadd.xlane.f32.xlu2 %v240_v5  ;;  %54 = vst.msk [vmem:[#allocation3 + $0x8] sm:$0xff] %vm48_vm0, %v438_v8 }
  0x13   :  { %55 = vst.msk [vmem:[#allocation3 + $0x10] sm:$0xff] %vm48_vm0, %v438_v8 }
  0x14   :  { %56 = vst.msk [vmem:[#allocation3 + $0x18] sm:$0xff] %vm48_vm0, %v438_v8  ;;  %v66_v33 = vld [vmem:[#allocation2] sm:$0xff] }
  0x15   :  { %158 = vxpose.xlu1.b32.end [2/2] (short) (narrow) %v65_v2, 32  ;;  %71 = vxpose.xlu0.b32.end [2/2] (short) (narrow) %v63_v3, 32  ;;  %58 = vst.msk [vmem:[#allocation4] sm:$0xff] %vm57_vm2, %v438_v8  ;;  %v67_v46 = vld [vmem:[#allocation2 + $0x8] sm:$0xff] }
  0x16   :  { %60 = vst.msk [vmem:[#allocation5] sm:$0xff] %vm57_vm2, %v438_v8  ;;  %v68_v51 = vld [vmem:[#allocation2 + $0x10] sm:$0xff] }
  0x17   :  { %59 = vst.msk [vmem:[#allocation4 + $0x8] sm:$0xff] %vm57_vm2, %v438_v8  ;;  %v69_v57 = vld [vmem:[#allocation2 + $0x18] sm:$0xff] }
  0x18   :  { %61 = vst.msk [vmem:[#allocation5 + $0x8] sm:$0xff] %vm57_vm2, %v438_v8  ;;  %v153_v34 = vld [vmem:[#allocation3] sm:$0xff] }
  0x19   :  { %v154_v45 = vld [vmem:[#allocation3 + $0x8] sm:$0xff] }
  0x1a   :  { %244 = vadd.xlane.f32.xlu2 %v243_v7  ;;  %v155_v52 = vld [vmem:[#allocation3 + $0x10] sm:$0xff] }
  0x1b   :  { %v156_v58 = vld [vmem:[#allocation3 + $0x18] sm:$0xff] }
  0x1c   :  { %v246_v19 = vld [vmem:[#allocation4] sm:$0xff] }
  0x1d   :  { %v253_v22 = vld [vmem:[#allocation5] sm:$0xff] }
  0x1e   :  { %v247_v25 = vld [vmem:[#allocation4 + $0x8] sm:$0xff] }
  0x1f   :  { %v254_v27 = vld [vmem:[#allocation5 + $0x8] sm:$0xff] }
  0x85   :  { %v242_v17 = vpop.xlane.xlu2 %241 }
  0x86   :  { %v255_v18 = vmul.f32 %v242_v17, %v242_v17  ;;  %v248_v21 = vadd.f32 %v246_v19, %v242_v17 }
  0x88   :  { %v257_v24 = vadd.f32 %v255_v18, %v253_v22  ;;  %251 = vst.msk [vmem:[#allocation4] sm:$0xff] %vm57_vm2, %v248_v21 }
  0x8a   :  { %259 = vst.msk [vmem:[#allocation5] sm:$0xff] %vm57_vm2, %v257_v24 }
  0x8d   :  { %v245_v20 = vpop.xlane.xlu2 %244 }
  0x8e   :  { %v256_v23 = vmul.f32 %v245_v20, %v245_v20  ;;  %v249_v26 = vadd.f32 %v247_v25, %v245_v20 }
  0x8f   :  { %v292_v29 = vld [vmem:[#allocation4] sm:$0xff] }
  0x90   :  { %v258_v28 = vadd.f32 %v256_v23, %v254_v27  ;;  %252 = vst.msk [vmem:[#allocation4 + $0x8] sm:$0xff] %vm57_vm2, %v249_v26  ;;  %v294_v30 = vsel %vm57_vm2, %v292_v29, 0.0 }
  0x91   :  { %v306_v32 = vld [vmem:[#allocation5] sm:$0xff] }
  0x92   :  { %260 = vst.msk [vmem:[#allocation5 + $0x8] sm:$0xff] %vm57_vm2, %v258_v28  ;;  %v308_v37 = vsel %vm57_vm2, %v306_v32, 0.0 }
  0x97   :  { %v293_v31 = vld [vmem:[#allocation4 + $0x8] sm:$0xff] }
  0x98   :  { %v295_v35 = vsel %vm57_vm2, %v293_v31, 0.0 }
  0x99   :  { %v307_v36 = vld [vmem:[#allocation5 + $0x8] sm:$0xff]  ;;  %v296_v38 = vadd.f32 %v295_v35, %v294_v30 }
  0x9a   :  { %v309_v39 = vsel %vm57_vm2, %v307_v36, 0.0 }
  0x9b   :  { %v310_v42 = vadd.f32 %v309_v39, %v308_v37  ;;  %297 = vadd.xlane.f32.xlu1 %v296_v38 }
  0x9d   :  { %311 = vadd.xlane.f32.xlu2 %v310_v42 }
  0xb1   :  { %v173_v9 = vpop.trf.xlu1  ;;  %v86_v10 = vpop.trf.xlu0 }
  0xb2   :  { %344 = vmatmul.msk.f32.vlgmr.msra.gmra.mxu0 %vm102_vm1, %v86_v10  ;;  %348 = vmatmul.msk.f32.vlgmr.msra.gmra.mxu1 %vm102_vm1, %v173_v9 }
  0xb9   :  { %v174_v11 = vpop.trf.xlu1  ;;  %v87_v12 = vpop.trf.xlu0 }
  0xba   :  { %345 = vmatmul.msk.f32.gmra.mxu0 %vm102_vm1, %v87_v12  ;;  %349 = vmatmul.msk.f32.gmra.mxu1 %vm102_vm1, %v174_v11 }
  0xc1   :  { %v175_v13 = vpop.trf.xlu1  ;;  %v88_v14 = vpop.trf.xlu0 }
  0xc2   :  { %346 = vmatmul.msk.f32.vlgmr.msra.gmra.mxu2 %vm102_vm1, %v88_v14  ;;  %350 = vmatmul.msk.f32.vlgmr.msra.gmra.mxu3 %vm102_vm1, %v175_v13 }
  0xc9   :  { %v176_v15 = vpop.trf.xlu1  ;;  %v89_v16 = vpop.trf.xlu0 }
  0xca   :  { %347 = vmatmul.msk.f32.gmra.mxu2 %vm102_vm1, %v89_v16  ;;  %351 = vmatmul.msk.f32.gmra.mxu3 %vm102_vm1, %v176_v15 }
 0x10e   :  { %v298_v18 = vpop.xlane.xlu1 %297 }
 0x10f   :  { %v299_v20 = vrot.slane %v298_v18, 4 }
 0x110   :  { %v312_v19 = vpop.xlane.xlu2 %311 }
 0x111   :  { %v313_v21 = vrot.slane %v312_v19, 4  ;;  %v300_v22 = vadd.f32 %v299_v20, %v298_v18 }
 0x113   :  { %v314_v23 = vadd.f32 %v313_v21, %v312_v19  ;;  %v301_v24 = vrot.slane %v300_v22, 2 }
 0x115   :  { %v315_v26 = vrot.slane %v314_v23, 2  ;;  %v302_v29 = vadd.f32 %v301_v24, %v300_v22 }
 0x117   :  { %v316_v30 = vadd.f32 %v315_v26, %v314_v23 }
 0x119   :  { %v317_v35 = vrot.slane %v316_v30, 1 }
 0x11b   :  { %v318_v38 = vadd.f32 %v317_v35, %v316_v30 }
 0x12f   :  { %v132_v40 = vpop.f32.mrf.mxu0  ;;  %v218_v41 = vpop.f32.mrf.mxu1 }
 0x130   :  { %v144_v43 = vadd.f32 %v132_v40, %v66_v33  ;;  %v230_v44 = vadd.f32 %v218_v41, %v153_v34  ;;  %v303_v33 = vrot.slane %v302_v29, 1 }
 0x132   :  { %149 = vst.msk [vmem:[#allocation2] sm:$0xff] %vm48_vm0, %v144_v43  ;;  %v304_v37 = vadd.f32 %v303_v33, %v302_v29 }
 0x133   :  { %234 = vst.msk [vmem:[#allocation3] sm:$0xff] %vm48_vm0, %v230_v44 }
 0x137   :  { %v221_v47 = vpop.f32.mrf.mxu1  ;;  %v135_v48 = vpop.f32.mrf.mxu0 }
 0x138   :  { %v231_v49 = vadd.f32 %v221_v47, %v154_v45  ;;  %v145_v50 = vadd.f32 %v135_v48, %v67_v46 }
 0x139   :  { %v264_v1 = vld [vmem:[#allocation2] sm:$0xff] }
 0x13a   :  { %235 = vst.msk [vmem:[#allocation3 + $0x8] sm:$0xff] %vm48_vm0, %v231_v49  ;;  %v268_v3 = vld [vmem:[#allocation3] sm:$0xff] }
 0x13b   :  { %150 = vst.msk [vmem:[#allocation2 + $0x8] sm:$0xff] %vm48_vm0, %v145_v50  ;;  %v272_v6 = vmul.f32 %v268_v3, %v264_v1 }
 0x13d   :  { %v276_v10 = vsel %vm48_vm0, %v272_v6, 0.0 }
 0x141   :  { %v269_v0 = vld [vmem:[#allocation3 + $0x8] sm:$0xff] }
 0x142   :  { %v265_v63 = vld [vmem:[#allocation2 + $0x8] sm:$0xff] }
 0x143   :  { %v273_v5 = vmul.f32 %v269_v0, %v265_v63 }
 0x145   :  { %v138_v53 = vpop.f32.mrf.mxu2  ;;  %v224_v54 = vpop.f32.mrf.mxu3  ;;  %v277_v8 = vsel %vm48_vm0, %v273_v5, 0.0 }
 0x146   :  { %v146_v55 = vadd.f32 %v138_v53, %v68_v51  ;;  %v232_v56 = vadd.f32 %v224_v54, %v155_v52  ;;  %v278_v13 = vadd.f32 %v277_v8, %v276_v10 }
 0x148   :  { %151 = vst.msk [vmem:[#allocation2 + $0x10] sm:$0xff] %vm48_vm0, %v146_v55 }
 0x149   :  { %236 = vst.msk [vmem:[#allocation3 + $0x10] sm:$0xff] %vm48_vm0, %v232_v56 }
 0x14d   :  { %v141_v59 = vpop.f32.mrf.mxu2  ;;  %v227_v60 = vpop.f32.mrf.mxu3 }
 0x14e   :  { %v147_v61 = vadd.f32 %v141_v59, %v69_v57  ;;  %v233_v62 = vadd.f32 %v227_v60, %v156_v58 }
 0x14f   :  { %v266_v2 = vld [vmem:[#allocation2 + $0x10] sm:$0xff] }
 0x150   :  { %152 = vst.msk [vmem:[#allocation2 + $0x18] sm:$0xff] %vm48_vm0, %v147_v61  ;;  %v270_v4 = vld [vmem:[#allocation3 + $0x10] sm:$0xff] }
 0x151   :  { %237 = vst.msk [vmem:[#allocation3 + $0x18] sm:$0xff] %vm48_vm0, %v233_v62  ;;  %v274_v7 = vmul.f32 %v270_v4, %v266_v2 }
 0x153   :  { %v279_v11 = vsel %vm48_vm0, %v274_v7, 0.0 }
 0x154   :  { %v280_v15 = vadd.f32 %v279_v11, %v278_v13 }
 0x157   :  { %v267_v9 = vld [vmem:[#allocation2 + $0x18] sm:$0xff] }
 0x158   :  { %v271_v12 = vld [vmem:[#allocation3 + $0x18] sm:$0xff] }
 0x159   :  { %v275_v14 = vmul.f32 %v271_v12, %v267_v9 }
 0x15b   :  { %v281_v16 = vsel %vm48_vm0, %v275_v14, 0.0 }
 0x15c   :  { %v282_v17 = vadd.f32 %v281_v16, %v280_v15 }
 0x15e   :  { %283 = vadd.xlane.f32.xlu0 %v282_v17 }
 0x1d1   :  { %v284_v25 = vpop.xlane.xlu0 %283 }
 0x1d2   :  { %v285_v27 = vrot.slane %v284_v25, 4 }
 0x1d4   :  { %v286_v28 = vadd.f32 %v285_v27, %v284_v25 }
 0x1d6   :  { %v287_v31 = vrot.slane %v286_v28, 2 }
 0x1d8   :  { %v288_v32 = vadd.f32 %v287_v31, %v286_v28 }
 0x1da   :  { %v289_v34 = vrot.slane %v288_v32, 1 }
 0x1dc   :  { %v290_v36 = vadd.f32 %v289_v34, %v288_v32 }
 0x1de   :  { %356 = vpush %v290_v36 }
 0x1df   :  { %358 = vpush %v304_v37 }
 0x1e0   :  { %360 = vpush %v318_v38 }
 0x20f   :  { %s357_s0 = spop %356 }
 0x210   :  { %s359_s1 = spop %358 }
 0x211   :  { %s320_s21 = smul.f32 -2.0, %s359_s1  ;;  %s361_s22 = spop %360 }
 0x212   :  { %s322_s23 = ssub.f32 %s357_s0, %s361_s22 }
 0x213   :  { %s321_s27 = smul.f32 0.125, %s320_s21 }
 0x214   :  { %s323_s28 = smul.f32 0.017857144, %s322_s23 }
 0x216   :  { %s324_s29 = sadd.f32 %s323_s28, %s321_s27 }
 0x218   :  { %326 = sst [smem:[#allocation11]] %s324_s29 }
 0x219   :  { %335 = dma.smem_to_hbm %s439_s30, 16, %s333_s26, [#allocation8]  }
 0x21a   :  { %432 = dma.done.wait [#allocation8], 16  }
 0x21b   :  { %433 = vsyncadd [#allocation8], 4294967280 }
 0x21c   :  { %340 = sfence }
 0x21d   :  { %341 = vsyncpa [#allocation7], 1 }
 0x21e   :  { %342 = vsyncpa [#allocation10], 1 }
 0x21f   :  { %343 = vsyncpa [#allocation8], 1 }

</bundles_post_ra>
